<compile_context>
chip_gen: v7x
topology: tpu7x:2x2x1
jax: 0.10.0
libtpu: 0.0.40
codegen_flags: <defaults>
</compile_context>

<pallas_src>
import jax
import jax.numpy as jnp
from jax.experimental import pallas as pl
from jax.experimental.pallas import tpu as pltpu

TB_MAX = 512  # batch-tile rows per grid step


def _round_up(x, m):
    return (x + m - 1) // m * m


# ----------------------------------------------------------------------------
# Kernel: one net (selected by the grid's net axis) over one batch tile.
# Ref order: x, w0, w1, ..., w_{L-1}, b_pack, out.
# ----------------------------------------------------------------------------
def make_rnd_kernel(n_layers, feat_dims):
    def kernel(x_ref, *refs):
        w_refs = refs[:n_layers]
        b_ref = refs[n_layers]          # (1, n_layers, max_fo) f32, this net's biases
        o_ref = refs[n_layers + 1]      # (1, tb, OUT) f32

        h = x_ref[...]                  # (tb, IN) f32 — DMA'd once per batch tile,
                                        # reused by both net steps (constant block idx).
        b_all = b_ref[0]                # (n_layers, max_fo) f32

        for li in range(n_layers):
            fo = feat_dims[li + 1]
            w = w_refs[li][0]           # (fi, fo) f32
            b = b_all[li:li + 1, :fo]   # (1, fo) f32
            acc = jnp.dot(h, w, preferred_element_type=jnp.float32) + b
            h = jnp.maximum(acc, 0.0) if li < n_layers - 1 else acc

        o_ref[0] = h                    # (tb, OUT) f32, lane-masked store (OUT small)

    return kernel


# ----------------------------------------------------------------------------
# Parameters (mimic RNDNetwork init: weights ~ N(0, 0.01), biases = nn.Linear
# default uniform(+-1/sqrt(fan_in)); weights stored pre-transposed (in, out)).
# ----------------------------------------------------------------------------
def init_net_params(key, input_dim, hidden_dim, output_dim, hidden_layers_num):
    dims = [input_dim] + [hidden_dim] * (hidden_layers_num + 1) + [output_dim]
    n_layers = hidden_layers_num + 2
    keys = jax.random.split(key, 2 * n_layers)
    params = []
    for li in range(n_layers):
        fan_in, fan_out = dims[li], dims[li + 1]
        w = 0.01 * jax.random.normal(keys[2 * li], (fan_in, fan_out), jnp.float32)
        bound = 1.0 / jnp.sqrt(jnp.float32(fan_in))
        b = jax.random.uniform(keys[2 * li + 1], (1, fan_out), jnp.float32,
                               -bound, bound)
        params.append((w, b))
    return params


# ----------------------------------------------------------------------------
# Forward wrapper (equivalent to RNDNetwork.forward: returns (predict, target))
# ----------------------------------------------------------------------------
def rnd_forward(state, pred_params, tgt_params):
    if state.ndim == 1:                 # torch.unsqueeze(FloatTensor(state), 0)
        state = state[None, :]
    state = state.astype(jnp.float32)
    B, in_dim = state.shape

    n_layers = len(pred_params)
    dims = [in_dim] + [w.shape[1] for (w, _) in pred_params]
    out_dim = dims[-1]
    max_fo = max(dims[1:])

    # Stack predictor/target weights per layer -> (2, fi, fo) so the net-id
    # grid axis indexes them; pack all biases into one (2, n_layers, max_fo).
    w_stacked = [jnp.stack([pw, tw])
                 for (pw, _), (tw, _) in zip(pred_params, tgt_params)]
    b_pack = jnp.zeros((2, n_layers, max_fo), jnp.float32)
    for li, ((_, pb), (_, tb_)) in enumerate(zip(pred_params, tgt_params)):
        fo = dims[li + 1]
        b_pack = b_pack.at[0, li, :fo].set(pb.reshape(-1))
        b_pack = b_pack.at[1, li, :fo].set(tb_.reshape(-1))

    # Batch tiling: single block for B <= TB_MAX (no padding, no extra copy);
    # otherwise TB_MAX-row tiles (pad batch only, cheap vs. feature padding).
    if B <= TB_MAX:
        tb, B_total, x_in = B, B, state
    else:
        tb = TB_MAX
        B_total = _round_up(B, tb)
        x_in = state if B_total == B else jnp.pad(state, ((0, B_total - B), (0, 0)))
    nb = B_total // tb
    grid = (nb, 2)                      # (batch tiles, net id) — both "parallel"

    x_spec = pl.BlockSpec((tb, in_dim), lambda i, n: (i, 0))
    in_specs = [x_spec]
    for li in range(n_layers):
        fi, fo = dims[li], dims[li + 1]
        in_specs.append(pl.BlockSpec((1, fi, fo), lambda i, n: (n, 0, 0)))
    in_specs.append(pl.BlockSpec((1, n_layers, max_fo), lambda i, n: (n, 0, 0)))
    out_spec = pl.BlockSpec((1, tb, out_dim), lambda i, n: (n, i, 0))

    flops = 2 * sum(2 * B_total * dims[li] * dims[li + 1] for li in range(n_layers))
    bytes_accessed = (x_in.size * 4
                      + sum(w.size * 4 for w in w_stacked) + b_pack.size * 4
                      + 2 * B_total * out_dim * 4)
    cost = pl.CostEstimate(flops=flops, transcendentals=0,
                           bytes_accessed=bytes_accessed)

    # Explicit VMEM budget: double-buffered x/out/weights/bias tiles, 4x headroom,
    # clamped well under v7x's 64 MiB physical (32 MiB scoped) and v5e's 16 MiB.
    vmem_need = 2 * (tb * in_dim * 4 + tb * out_dim * 4
                     + sum(dims[li] * dims[li + 1] * 4 for li in range(n_layers))
                     + n_layers * max_fo * 4)
    vmem_limit = int(min(100 * 2 ** 20, max(4 * 2 ** 20, 4 * vmem_need)))

    out = pl.pallas_call(
        make_rnd_kernel(n_layers, dims),
        out_shape=jax.ShapeDtypeStruct((2, B_total, out_dim), jnp.float32),
        grid=grid,
        in_specs=in_specs,
        out_specs=out_spec,
        compiler_params=pltpu.CompilerParams(
            dimension_semantics=("parallel", "parallel"),
            vmem_limit_bytes=vmem_limit),
        cost_estimate=cost,
    )(x_in, *w_stacked, b_pack)

    return out[0, :B], out[1, :B]


# ----------------------------------------------------------------------------
# Pure-JAX f32 reference
# ----------------------------------------------------------------------------
def net_reference(x, params):
    h = x
    for li, (w, b) in enumerate(params):
        h = h @ w + b
        if li < len(params) - 1:
            h = jnp.maximum(h, 0.0)
    return h


if __name__ == "__main__":
    key = jax.random.PRNGKey(0)
    k_pred, k_tgt, k_x = jax.random.split(key, 3)

    INPUT_DIM, HIDDEN_DIM, OUTPUT_DIM, HIDDEN_DIM_NUM = 16, 32, 4, 1
    batch = 8

    pred_params = init_net_params(k_pred, INPUT_DIM, HIDDEN_DIM, OUTPUT_DIM,
                                  HIDDEN_DIM_NUM)
    tgt_params = init_net_params(k_tgt, INPUT_DIM, HIDDEN_DIM, OUTPUT_DIM,
                                 HIDDEN_DIM_NUM)
    state = jax.random.normal(k_x, (batch, INPUT_DIM), jnp.float32)

    predict, target = rnd_forward(state, pred_params, tgt_params)
    predict, target = jax.block_until_ready((predict, target))

    pred_ref = net_reference(state, pred_params)
    tgt_ref = net_reference(state, tgt_params)

    assert predict.shape == (batch, OUTPUT_DIM), predict.shape
    assert target.shape == (batch, OUTPUT_DIM), target.shape
    # Full-f32 kernel path; loose-but-safe tolerance vs the f32 reference.
    assert jnp.allclose(predict, pred_ref, rtol=2e-2, atol=2e-3), "predictor mismatch"
    assert jnp.allclose(target, tgt_ref, rtol=2e-2, atol=2e-3), "target mismatch"

    print("KERNEL_OK")
</pallas_src>

<mosaic_0001>
module attributes {stable_mosaic.version = 11 : i64} {
  func.func @kernel(%arg0: i32, %arg1: i32, %arg2: memref<8x16xf32, #tpu.memory_space<vmem>>, %arg3: memref<1x16x32xf32, #tpu.memory_space<vmem>>, %arg4: memref<1x32x32xf32, #tpu.memory_space<vmem>>, %arg5: memref<1x32x4xf32, #tpu.memory_space<vmem>>, %arg6: memref<1x3x32xf32, #tpu.memory_space<vmem>>, %arg7: memref<1x8x4xf32, #tpu.memory_space<vmem>>) attributes {dimension_semantics = [#tpu.dimension_semantics<parallel>, #tpu.dimension_semantics<parallel>], iteration_bounds = array<i64: 1, 2>, scalar_prefetch = 0 : i64, scratch_operands = 0 : i64, tpu.core_type = #tpu.core_type<tc>, window_params = [{transform_indices = @transform_0, window_bounds = array<i64: 8, 16>}, {transform_indices = @transform_1, window_bounds = array<i64: 1, 16, 32>}, {transform_indices = @transform_2, window_bounds = array<i64: 1, 32, 32>}, {transform_indices = @transform_3, window_bounds = array<i64: 1, 32, 4>}, {transform_indices = @transform_4, window_bounds = array<i64: 1, 3, 32>}, {transform_indices = @transform_5, window_bounds = array<i64: 1, 8, 4>}]} {
    %c0 = arith.constant 0 : index
    %c0_0 = arith.constant 0 : index
    %0 = vector.load %arg2[%c0, %c0_0] : memref<8x16xf32, #tpu.memory_space<vmem>>, vector<8x16xf32>
    %c0_1 = arith.constant 0 : index
    %c0_2 = arith.constant 0 : index
    %c0_3 = arith.constant 0 : index
    %1 = vector.load %arg6[%c0_1, %c0_2, %c0_3] : memref<1x3x32xf32, #tpu.memory_space<vmem>>, vector<1x3x32xf32>
    %2 = vector.shape_cast %1 : vector<1x3x32xf32> to vector<3x32xf32>
    %c0_4 = arith.constant 0 : index
    %c0_5 = arith.constant 0 : index
    %c0_6 = arith.constant 0 : index
    %3 = vector.load %arg3[%c0_4, %c0_5, %c0_6] : memref<1x16x32xf32, #tpu.memory_space<vmem>>, vector<1x16x32xf32>
    %4 = vector.shape_cast %3 : vector<1x16x32xf32> to vector<16x32xf32>
    %5 = vector.extract_strided_slice %2 {offsets = [0, 0], sizes = [1, 32], strides = [1, 1]} : vector<3x32xf32> to vector<1x32xf32>
    %cst = arith.constant dense<0.000000e+00> : vector<8x32xf32>
    %6 = tpu.matmul %0, %4, %cst {dimension_numbers = #tpu.dot_dimension_numbers<[1], [0], [0], [1], [0, 0, 1, 1], [], []>} : vector<8x16xf32>, vector<16x32xf32>, vector<8x32xf32> -> vector<8x32xf32>
    %7 = vector.broadcast %5 : vector<1x32xf32> to vector<8x32xf32>
    %8 = arith.addf %6, %7 : vector<8x32xf32>
    %cst_7 = arith.constant 0.000000e+00 : f32
    %9 = vector.broadcast %cst_7 : f32 to vector<8x32xf32>
    %10 = arith.maximumf %8, %9 : vector<8x32xf32>
    %c0_8 = arith.constant 0 : index
    %c0_9 = arith.constant 0 : index
    %c0_10 = arith.constant 0 : index
    %11 = vector.load %arg4[%c0_8, %c0_9, %c0_10] : memref<1x32x32xf32, #tpu.memory_space<vmem>>, vector<1x32x32xf32>
    %12 = vector.shape_cast %11 : vector<1x32x32xf32> to vector<32x32xf32>
    %13 = vector.extract_strided_slice %2 {offsets = [1, 0], sizes = [1, 32], strides = [1, 1]} : vector<3x32xf32> to vector<1x32xf32>
    %cst_11 = arith.constant dense<0.000000e+00> : vector<8x32xf32>
    %14 = tpu.matmul %10, %12, %cst_11 {dimension_numbers = #tpu.dot_dimension_numbers<[1], [0], [0], [1], [0, 0, 1, 1], [], []>} : vector<8x32xf32>, vector<32x32xf32>, vector<8x32xf32> -> vector<8x32xf32>
    %15 = vector.broadcast %13 : vector<1x32xf32> to vector<8x32xf32>
    %16 = arith.addf %14, %15 : vector<8x32xf32>
    %cst_12 = arith.constant 0.000000e+00 : f32
    %17 = vector.broadcast %cst_12 : f32 to vector<8x32xf32>
    %18 = arith.maximumf %16, %17 : vector<8x32xf32>
    %c0_13 = arith.constant 0 : index
    %c0_14 = arith.constant 0 : index
    %c0_15 = arith.constant 0 : index
    %19 = vector.load %arg5[%c0_13, %c0_14, %c0_15] : memref<1x32x4xf32, #tpu.memory_space<vmem>>, vector<1x32x4xf32>
    %20 = vector.shape_cast %19 : vector<1x32x4xf32> to vector<32x4xf32>
    %21 = vector.extract_strided_slice %2 {offsets = [2, 0], sizes = [1, 4], strides = [1, 1]} : vector<3x32xf32> to vector<1x4xf32>
    %cst_16 = arith.constant dense<0.000000e+00> : vector<8x4xf32>
    %22 = tpu.matmul %18, %20, %cst_16 {dimension_numbers = #tpu.dot_dimension_numbers<[1], [0], [0], [1], [0, 0, 1, 1], [], []>} : vector<8x32xf32>, vector<32x4xf32>, vector<8x4xf32> -> vector<8x4xf32>
    %23 = vector.broadcast %21 : vector<1x4xf32> to vector<8x4xf32>
    %24 = arith.addf %22, %23 : vector<8x4xf32>
    %c0_17 = arith.constant 0 : index
    %c0_18 = arith.constant 0 : index
    %c0_19 = arith.constant 0 : index
    %25 = vector.load %arg7[%c0_17, %c0_18, %c0_19] : memref<1x8x4xf32, #tpu.memory_space<vmem>>, vector<1x8x4xf32>
    %26 = vector.shape_cast %25 : vector<1x8x4xf32> to vector<8x4xf32>
    %27 = vector.shape_cast %24 : vector<8x4xf32> to vector<1x8x4xf32>
    tpu.vector_store %arg7[%c0_17, %c0_18, %c0_19], %27 {strides = array<i32>} : memref<1x8x4xf32, #tpu.memory_space<vmem>>, vector<1x8x4xf32>,
    return
  }
  func.func @transform_0(%arg0: i32, %arg1: i32) -> (i32, i32) {
    %c0_i32 = arith.constant 0 : i32
    %c0_i32_0 = arith.constant 0 : i32
    return %arg0, %c0_i32 : i32, i32
  }
  func.func @transform_1(%arg0: i32, %arg1: i32) -> (i32, i32, i32) {
    %c0_i32 = arith.constant 0 : i32
    %c0_i32_0 = arith.constant 0 : i32
    %c0_i32_1 = arith.constant 0 : i32
    return %arg1, %c0_i32, %c0_i32_0 : i32, i32, i32
  }
  func.func @transform_2(%arg0: i32, %arg1: i32) -> (i32, i32, i32) {
    %c0_i32 = arith.constant 0 : i32
    %c0_i32_0 = arith.constant 0 : i32
    %c0_i32_1 = arith.constant 0 : i32
    return %arg1, %c0_i32, %c0_i32_0 : i32, i32, i32
  }
  func.func @transform_3(%arg0: i32, %arg1: i32) -> (i32, i32, i32) {
    %c0_i32 = arith.constant 0 : i32
    %c0_i32_0 = arith.constant 0 : i32
    %c0_i32_1 = arith.constant 0 : i32
    return %arg1, %c0_i32, %c0_i32_0 : i32, i32, i32
  }
  func.func @transform_4(%arg0: i32, %arg1: i32) -> (i32, i32, i32) {
    %c0_i32 = arith.constant 0 : i32
    %c0_i32_0 = arith.constant 0 : i32
    %c0_i32_1 = arith.constant 0 : i32
    return %arg1, %c0_i32, %c0_i32_0 : i32, i32, i32
  }
  func.func @transform_5(%arg0: i32, %arg1: i32) -> (i32, i32, i32) {
    %c0_i32 = arith.constant 0 : i32
    %c0_i32_0 = arith.constant 0 : i32
    return %arg1, %arg0, %c0_i32 : i32, i32, i32
  }
}

</mosaic_0001>

<bundles_post_ra>
// kernel: tpu_custom_call.1
= control target key start
LH: loop header
LB: loop body
LE: loop exit
PB: predicated region body
PF: predicated region fallthrough
CT: control target
= control target key end

     0   :  { %10 = vsyncpa [#allocation3], 0  ;;  %s1123_s0 = inlined_call_operand.vmem [shape: f32[8,16], index: 0, kind: input, shape index: {}]   ;;  %s1124_s1 = inlined_call_operand.hbm [shape: f32[2,16,32], index: 1, kind: input, shape index: {}]   ;;  %s1125_s2 = inlined_call_operand.vmem [shape: f32[2,32,32], index: 2, kind: input, shape index: {}]   ;;  %s1126_s3 = inlined_call_operand.vmem [shape: f32[2,32,4], index: 3, kind: input, shape index: {}]   ;;  %s1127_s4 = inlined_call_operand.vmem [shape: f32[2,3,32], index: 4, kind: input, shape index: {}]   ;;  %s1128_s5 = inlined_call_operand.vmem [shape: f32[2,8,4], index: 5, kind: output, shape index: {}]  }
   0x1   :  { %12 = vsyncpa [#allocation3 + $0x1], 0  ;;  %s979_s18 = smov 0   ;;  %s981_s19 = smov 0  }
   0x2   :  { %s983_s20 = smov 0   ;;  %s985_s21 = smov 0  }
   0x3   :  { %s987_s22 = smov 0   ;;  %s989_s23 = smov 0  }
   0x4 LB: > { %s720_s24 = sadd.s32 4294967295, %s941_s23   ;;  %s27_s25 = sadd.s32 1, %s937_s22  ;;  %s941_s23 = sphi %s989_s23, %s18_s23   ;;  %s937_s22 = sphi %s987_s22, %s1136_s22   ;;  %s933_s21 = sphi %s985_s21, %s1135_s21   ;;  %s929_s20 = sphi %s983_s20, %s1134_s20   ;;  %s925_s19 = sphi %s981_s19, %s1133_s19   ;;  %s921_s18 = sphi %s979_s18, %s1132_s18  }
   0x5   : > { %p28_p0 = scmp.ge.s32.totalorder %s27_s25, 2  ;;  %s63_s26 = sadd.s32 1, %s929_s20 }
   0x6   : > { %p70_p1 = scmp.ne.s32.totalorder %s929_s20, %s925_s19  ;;  %p71_p2 = scmp.eq.s32.totalorder %s941_s23, 0 }
   0x7   : > { %s1138_s25 = smov (%p28_p0, %s27_s25), 0  ;;  %p76_p4 = scmp.ne.s32.totalorder %s925_s19, %s921_s18 }
   0x8   : > { %p1015_p3 = por %p71_p2, %p70_p1  ;;  %s60_s28 = ssub.s32 %s937_s22, %s1138_s25 }
   0x9   : > { %p77_p5 = scmp.eq.s32.totalorder %s720_s24, 0  ;;  %p61_p6 = scmp.eq.s32.totalorder %s60_s28, 0 }
   0xa   : > { %p807_p8 = scmp.lt.s32.totalorder %s941_s23, 2  ;;  %s213_s6 = sand.u32 1, %s929_s20  }
   0xb   : > { %p1022_p7 = por %p77_p5, %p76_p4  ;;  %s741_s7 = sshll.u32 %s937_s22, 8 }
   0xc   : > { %s1028_s30 = scalar_select %p61_p6, %s929_s20, %s63_s26  }
   0xd   : > { %s725_s8 = sshll.u32 %s213_s6, 4  ;;  %s1035_s11 = scalar_lea.hbm %s1124_s1, %s741_s7 }
   0xe   : > { %s217_s12 = scalar_lea.vmem [#allocation2], %s725_s8  ;;  %p1039_p9 = pnand %p807_p8, %p1015_p3 }
   0xf   : > { %s224_s13 = sshll.u32 %s217_s12, 4  ;;  %s1045_s15 = scalar_lea.sflag [#allocation3], %s213_s6  ;;  %s1043_s13 = int_to_ptr.vmem [resolvable:$true] %s224_s13 }
  0x10   : > { %s861_s16 = scalar_lea.hbm %s1035_s11, 256  ;;  %p863_p11 = pneg %p1039_p9 }
  0x11   : > { %p862_p10 = scmp.ne.s32.totalorder %s1035_s11, %s861_s16  ;;  %s866_s24 = scalar_lea.hbm %s1124_s1, 512 }
  0x12   : > { %p867_p0 = scmp.lt.u32.totalorder %s1035_s11, %s1124_s1  ;;  %p868_p1 = scmp.lt.u32.totalorder %s866_s24, %s861_s16 }
  0x13   : > { %p864_p12 = pnand %p863_p11, %p862_p10  ;;  %p870_p3 = scmp.lt.u32.totalorder %s861_s16, %s1035_s11 }
  0x14   : > { %p869_p2 = por %p868_p1, %p867_p0 }
  0x15   : > { %p865_p13 = pneg %p864_p12 }
  0x16   : > { %p871_p4 = por %p870_p3, %p869_p2 }
  0x18   : > { %p872_p5 = pnand %p871_p4, %p865_p13 }
  0x1a   : > { %875 = shalt.err (!%p872_p5)
}
  0x1b   : > { %s876_s28 = scalar_lea.vmem %s1043_s13, 256  ;;  %s943_s6 = smov [#allocation2]  }
  0x1c   : > { %p877_p6 = scmp.ne.s32.totalorder %s1043_s13, %s876_s28  ;;  %s881_s7 = sshll.u32 %s943_s6, 4  ;;  %s882_s7 = int_to_ptr.vmem [resolvable:$false] %s881_s7 }
  0x1d   : > { %s883_s8 = scalar_lea.vmem %s882_s7, 512  ;;  %p884_p12 = scmp.lt.s32.totalorder %s1043_s13, %s882_s7 }
  0x1e   : > { %p879_p8 = pnand %p877_p6, %p863_p11  ;;  %p885_p0 = scmp.lt.s32.totalorder %s883_s8, %s876_s28 }
  0x20   : > { %p880_p10 = pneg %p879_p8  ;;  %p886_p1 = por %p885_p0, %p884_p12 }
  0x22   : > { %p887_p2 = pnand %p886_p1, %p880_p10 }
  0x24   : > { %890 = shalt.err (!%p887_p2)
}
  0x25   : > { %s944_s9 = smov 128   ;;  %s945_s10 = smov 8  }
  0x26   : > { %806 = dma.hbm_to_vmem [thread:$0]  (!%p1039_p9), %s1035_s11, 256, %s1043_s13, %s1045_s15, %s944_s9, %s944_s9, %s945_s10  }
  0x27   : > { %p728_p11 = scmp.ge.s32.totalorder %s941_s23, 1  ;;  %p255_p13 = scmp.lt.s32.totalorder %s941_s23, 3 }
  0x29   : > { %p256_p3 = pnand %p728_p11, %p255_p13 }
  0x2a   : > { %s261_s12 = sand.u32 (!%p256_p3), 1, %s925_s19  }
  0x2b   : > { %259 = sbr.rel (%p256_p3) target bundleno = 705 (0x2c1), region = 40  ;;  %s729_s16 = sshll.u32 (!%p256_p3), %s261_s12, 4 }
  0x2c   : > { %s262_s17 = scalar_lea.sflag (!%p256_p3), [#allocation3], %s261_s12  ;;  %s265_s18 = scalar_lea.vmem (!%p256_p3), [#allocation2], %s729_s16 }
  0x32   : > { %916 = dma.done.wait (%p1022_p7), %s262_s17, 256  }
  0x33   : > { %918 = vsyncadd (%p1022_p7), %s262_s17, 4294967040  ;;  %p316_p4 = scmp.lt.s32.totalorder %s933_s21, 1  ;;  %v946_v0 = vmov 0.0|0.0   ;;  %vm947_vm0 = vmmov 0   ;;  %v948_v1 = vmov 0.0   ;;  %v339_v2 = vld [vmem:[%s265_s18] sm:$0xff]  ;;  %v341_v15 = vlaneseq }
  0x34   : > { %786 = vmatprep.subr.bf16.mxu0 %v946_v0  ;;  %761 = vmatprep.mubr.msk.f32.mxu0 %vm947_vm0, %v948_v1  ;;  %v340_v3 = vld [vmem:[%s265_s18 + $0x8] sm:$0xff]  ;;  %v337_v8 = vld [vmem:[%s1123_s0] sm:$0xff]  ;;  %vm345_vm1 = vcmask 130048   ;;  %vm428_vm2 = vcmask 261120   ;;  %vm584_vm3 = vcmask 31744  }
  0x35   : > { %789 = vmatprep.subr.bf16.mxu1 %v946_v0  ;;  %s1140_s21 = smov (!%p316_p4, %s933_s21), 1  ;;  %772 = vmatprep.mubr.msk.f32.mxu1 %vm947_vm0, %v948_v1  ;;  %v787_v4 = vpack.c.bf16 %v340_v3, %v339_v2  ;;  %v342_v16 = vshrl.u32 %v341_v15, 7 }
  0x36   : > { %s742_s11 = sshll.u32 %s1140_s21, 5  ;;  %s734_s6 = sshll.u32 %s1140_s21, 2 }
  0x37   : > { %s320_s29 = scalar_lea.vmem %s1125_s2, %s742_s11  ;;  %788 = vmatpush3.bf16.msra.mxu0 %v787_v4  ;;  %s325_s28 = scalar_lea.vmem %s1126_s3, %s742_s11  ;;  %v343_v17 = vsub.s32 0, %v342_v16  ;;  %v426_v27 = vsub.s32 1, %v342_v16  ;;  %v509_v33 = vsub.s32 2, %v342_v16 }
  0x38   : > { %v420_v5 = vld [vmem:[%s320_s29] sm:$0xff]  ;;  %v421_v6 = vld [vmem:[%s320_s29 + $0x8] sm:$0xff]  ;;  %795 = vmatprep.subr.bf16.mxu0 %v946_v0  ;;  %v422_v9 = vld [vmem:[%s320_s29 + $0x10] sm:$0xff]  ;;  %s329_s9 = scalar_lea.vmem %s1127_s4, %s734_s6  ;;  %s735_s10 = sshll.u32 %s1140_s21, 3 }
  0x39   : > { %v790_v7 = vpack.c.bf16 %v421_v6, %v420_v5  ;;  %v423_v10 = vld [vmem:[%s320_s29 + $0x18] sm:$0xff]  ;;  %v503_v12 = vld [vmem:[%s325_s28] sm:$0xff]  ;;  %v504_v13 = vld [vmem:[%s325_s28 + $0x8] sm:$0xff]  ;;  %s336_s17 = scalar_lea.vmem %s1128_s5, %s735_s10 }
  0x3a   : > { %762 = vmatmul.mubr.msk.f32.vlgmr.msra.gmra.mrb[0].mxu0 %vm345_vm1, %v337_v8  ;;  %v793_v11 = vpack.c.bf16 %v423_v10, %v422_v9  ;;  %v796_v14 = vpack.c.bf16 %v504_v13, %v503_v12  ;;  %v338_v18 = vld [vmem:[%s329_s9] sm:$0x7]  ;;  %v505_v24 = vld [vmem:[%s325_s28 + $0x10] sm:$0xff]  ;;  %v506_v25 = vld [vmem:[%s325_s28 + $0x18] sm:$0xff] }
  0x3b   : > { %791 = vmatpush3.bf16.msra.mxu1 %v790_v7  ;;  %783 = vmatprep.mubr.msk.f32.mxu0 %vm947_vm0, %v948_v1  ;;  %v344_v19 = vrot.slane %v338_v18, %v343_v17  ;;  %v799_v26 = vpack.c.bf16 %v506_v25, %v505_v24  ;;  %v427_v28 = vrot.slane %v338_v18, %v426_v27 }
  0x3c   : > { %792 = vmatprep.subr.bf16.mxu1 %v946_v0  ;;  %797 = vmatpush3.bf16.msra.mxu0 %v796_v14  ;;  %v510_v34 = vrot.slane %v338_v18, %v509_v33 }
  0x3d   : > { %798 = vmatprep.subr.bf16.mxu0 %v946_v0 }
  0x3f   : > { %794 = vmatpush3.bf16.msra.mxu1 %v793_v11 }
  0x40   : > { %800 = vmatpush3.bf16.msra.mxu0 %v799_v26 }
 0x10d   : > { %v415_v20 = vpop.f32.mrb[0].mxu0 }
 0x10e   : > { %v416_v21 = vadd.f32 %v415_v20, %v344_v19  ;;  %v763_v22 = vpop.f32.mrb[1].mxu0 }
 0x110   : > { %v419_v23 = vmax.f32 %v416_v21, 0.0 }
 0x112   : > { %773 = vmatmul.mubr.msk.f32.vlgmr.msra.gmra.mrb[0].mxu1 %vm428_vm2, %v419_v23 }
 0x1e5   : > { %v498_v29 = vpop.f32.mrb[0].mxu1 }
 0x1e6   : > { %v499_v30 = vadd.f32 %v498_v29, %v427_v28  ;;  %v774_v31 = vpop.f32.mrb[1].mxu1 }
 0x1e8   : > { %v502_v32 = vmax.f32 %v499_v30, 0.0 }
 0x1ea   : > { %784 = vmatmul.mubr.msk.f32.vlgmr.msra.gmra.mrb[2].mxu0 %vm428_vm2, %v502_v32 }
 0x2bd   : > { %v580_v35 = vpop.f32.mrb[2].mxu0 }
 0x2be   : > { %v581_v36 = vadd.f32 %v580_v35, %v510_v34  ;;  %v785_v37 = vpop.f32.mrb[3].mxu0 }
 0x2c0   : > { %585 = vst.msk [vmem:[%s336_s17] sm:$0xff] %vm584_vm3, %v581_v36 }
 0x2c1 PF: > { %s18_s23 = sadd.s32 1, %s941_s23   ;;  %s1132_s18 = smov %s925_s19 }
 0x2c2   : > { %p15_p7 = scmp.ge.s32.totalorder %s18_s23, 4   ;;  %s1133_s19 = smov %s929_s20 }
 0x2c3   : > { %s1134_s20 = smov %s1028_s30  ;;  %s1135_s21 = smov %s937_s22 }
 0x2c4   : > { %s1136_s22 = smov %s1138_s25  ;;  %17 = sbr.rel (!%p15_p7) target bundleno = 4 (0x4), region = 92 }
 0x2cb   :  { %611 = vsyncpa [#allocation3], 1 }
 0x2cc   :  { %613 = vsyncpa [#allocation3 + $0x1], 1 }

</bundles_post_ra>
